<compile_context>
chip_gen: v5e
topology: v5e:2x2
jax: 0.10.0
libtpu: 0.0.40
codegen_flags: <defaults>
</compile_context>

<pallas_src>
import jax
import jax.numpy as jnp
from jax.experimental import pallas as pl
from jax.experimental.pallas import tpu as pltpu


def nbeats_kernel(x_ref,
                  w1_ref, b1_ref, w2_ref, b2_ref, w3_ref, b3_ref, w4_ref, b4_ref,
                  wc_ref, bc_ref,
                  fore_ref):
    """Transposed (feature-major) N-BEATS forecast path.

    x_ref  : (input_dim, TILE_B)
    wN_ref : (hidden, in)         biases bN_ref: (hidden, 1)
    wc_ref : (output_dim, hidden) bias  bc_ref: (output_dim, 1)
    fore   : (output_dim, TILE_B)
    """

    def fc_relu(w_ref, b_ref, a):
        z = jnp.dot(w_ref[...], a.astype(w_ref.dtype),
                    preferred_element_type=jnp.float32) + b_ref[...]
        return jnp.maximum(z, 0.0)

    h = fc_relu(w1_ref, b1_ref, x_ref[...])
    h = fc_relu(w2_ref, b2_ref, h)
    h = fc_relu(w3_ref, b3_ref, h)
    h = fc_relu(w4_ref, b4_ref, h)

    # Fused theta_f + forecast basis: Wcomp = Wtf @ Wfc precomputed in the wrapper.
    f = jnp.dot(wc_ref[...], h.astype(wc_ref.dtype),
                preferred_element_type=jnp.float32) + bc_ref[...]
    fore_ref[...] = f.astype(fore_ref.dtype)


def init_params(key, input_dim, output_dim, hidden_dim, thetas_dim):
    """Parameters matching the PyTorch module.  Weights (in, out); biases (1, out)."""
    ks = jax.random.split(key, 8)

    def lin(k, fan_in, fan_out):
        bound = 1.0 / jnp.sqrt(jnp.float32(fan_in))
        kw, kb = jax.random.split(k)
        w = jax.random.uniform(kw, (fan_in, fan_out), jnp.float32, -bound, bound)
        b = jax.random.uniform(kb, (1, fan_out), jnp.float32, -bound, bound)
        return w, b

    w1, b1 = lin(ks[0], input_dim, hidden_dim)
    w2, b2 = lin(ks[1], hidden_dim, hidden_dim)
    w3, b3 = lin(ks[2], hidden_dim, hidden_dim)
    w4, b4 = lin(ks[3], hidden_dim, hidden_dim)
    hb = 1.0 / jnp.sqrt(jnp.float32(hidden_dim))
    # theta projections are bias-free in the reference implementation
    wtb = jax.random.uniform(ks[4], (hidden_dim, thetas_dim), jnp.float32, -hb, hb)
    wtf = jax.random.uniform(ks[5], (hidden_dim, thetas_dim), jnp.float32, -hb, hb)
    wbc, bbc = lin(ks[6], thetas_dim, input_dim)    # backcast basis (dead in forward output)
    wfc, bfc = lin(ks[7], thetas_dim, output_dim)   # forecast basis
    return (w1, b1, w2, b2, w3, b3, w4, b4, wtb, wtf, wbc, bbc, wfc, bfc)


def _pick_tile_b(B, tile_b):
    """Batch tile for the lane axis: multiple of 128, or the full batch if it is small."""
    if B <= tile_b:
        return B
    return max(128, (tile_b // 128) * 128)


def nbeats_forward(x, params, seq_len, num_nodes, features,
                   tile_b=512, use_bf16=False):
    """NBeatsModel.forward: flatten -> generic block forecast -> reshape."""
    (w1, b1, w2, b2, w3, b3, w4, b4,
     _wtb, wtf, _wbc, _bbc, wfc, bfc) = params  # wtb/wbc/bbc: dead backcast path

    B = x.shape[0]
    x2d = x.reshape(B, -1).astype(jnp.float32)
    input_dim = x2d.shape[1]
    output_dim = wfc.shape[1]
    hidden_dim = w1.shape[1]

    # --- wrapper-side layout / algebraic prep (all tiny, runs in XLA) ---------------
    # Fuse the forecast tail: h @ Wtf @ Wfc == h @ (Wtf @ Wfc).
    wcomp = wtf @ wfc                                      # (hidden, output_dim)

    # Batch-on-lanes layout: activations (features, batch), weights (out, in).
    xt = x2d.T                                             # (input_dim, B)
    wdtype = jnp.bfloat16 if use_bf16 else jnp.float32
    w1t, w2t, w3t, w4t = (w.T.astype(wdtype) for w in (w1, w2, w3, w4))
    wct = wcomp.T.astype(wdtype)                           # (output_dim, hidden)
    b1t, b2t, b3t, b4t = (b.T for b in (b1, b2, b3, b4))   # (hidden, 1), f32
    bct = bfc.T                                            # (output_dim, 1), f32

    tb = _pick_tile_b(B, tile_b)
    grid = (pl.cdiv(B, tb),)

    # x / forecast tiles march along the batch (lane) axis; weights & biases revisit
    # block (0, 0) every step so they stay resident in VMEM (no re-DMA).
    x_spec = pl.BlockSpec((input_dim, tb), lambda i: (0, i))
    out_spec = pl.BlockSpec((output_dim, tb), lambda i: (0, i))

    def const_spec(arr):
        return pl.BlockSpec(arr.shape, lambda i: (0, 0))

    weight_args = (w1t, b1t, w2t, b2t, w3t, b3t, w4t, b4t, wct, bct)

    fore_t = pl.pallas_call(
        nbeats_kernel,
        out_shape=jax.ShapeDtypeStruct((output_dim, B), jnp.float32),
        grid=grid,
        in_specs=[x_spec] + [const_spec(a) for a in weight_args],
        out_specs=out_spec,
        compiler_params=pltpu.CompilerParams(
            dimension_semantics=("parallel",)),
    )(xt, *weight_args)

    # (output_dim, B) -> (B, output_dim) -> (B, seq_len, num_nodes, features)
    return fore_t.T.reshape(B, seq_len, num_nodes, features)


def nbeats_reference(x, params, seq_len, num_nodes, features):
    """Pure-JAX reference (forecast path of NBeatsModel.forward)."""
    (w1, b1, w2, b2, w3, b3, w4, b4, _wtb, wtf, _wbc, _bbc, wfc, bfc) = params
    B = x.shape[0]
    xf = x.reshape(B, -1).astype(jnp.float32)
    h = jnp.maximum(xf @ w1 + b1, 0.0)
    h = jnp.maximum(h @ w2 + b2, 0.0)
    h = jnp.maximum(h @ w3 + b3, 0.0)
    h = jnp.maximum(h @ w4 + b4, 0.0)
    f = (h @ wtf) @ wfc + bfc
    return f.reshape(B, seq_len, num_nodes, features)


if __name__ == "__main__":
    # args.seq_len, args.num_nodes, args.features
    B, seq_len, num_nodes, features = 2, 8, 4, 1
    input_dim = seq_len * num_nodes * features    # backcast_length
    output_dim = seq_len * num_nodes * features   # forecast_length
    hidden_dim = 64                               # hidden_layer_units (module default)
    thetas_dim = 7                                # thetas_dim[0] for the single GENERIC stack

    key = jax.random.PRNGKey(0)
    kx, kp = jax.random.split(key)
    x = jax.random.normal(kx, (B, seq_len, num_nodes, features), jnp.float32)
    params = init_params(kp, input_dim, output_dim, hidden_dim, thetas_dim)

    forecast = nbeats_forward(x, params, seq_len, num_nodes, features)
    forecast = jax.block_until_ready(forecast)

    ref = nbeats_reference(x, params, seq_len, num_nodes, features)
    assert forecast.shape == (B, seq_len, num_nodes, features)
    assert jnp.allclose(forecast, ref, atol=1e-4, rtol=1e-4)

    print("KERNEL_OK")
</pallas_src>

<mosaic_0001>
module attributes {stable_mosaic.version = 11 : i64} {
  func.func @nbeats_kernel(%arg0: i32, %arg1: memref<32x2xf32, #tpu.memory_space<vmem>>, %arg2: memref<64x32xf32, #tpu.memory_space<vmem>>, %arg3: memref<64x1xf32, #tpu.memory_space<vmem>>, %arg4: memref<64x64xf32, #tpu.memory_space<vmem>>, %arg5: memref<64x1xf32, #tpu.memory_space<vmem>>, %arg6: memref<64x64xf32, #tpu.memory_space<vmem>>, %arg7: memref<64x1xf32, #tpu.memory_space<vmem>>, %arg8: memref<64x64xf32, #tpu.memory_space<vmem>>, %arg9: memref<64x1xf32, #tpu.memory_space<vmem>>, %arg10: memref<32x64xf32, #tpu.memory_space<vmem>>, %arg11: memref<32x1xf32, #tpu.memory_space<vmem>>, %arg12: memref<32x2xf32, #tpu.memory_space<vmem>>) attributes {dimension_semantics = [#tpu.dimension_semantics<parallel>], iteration_bounds = array<i64: 1>, scalar_prefetch = 0 : i64, scratch_operands = 0 : i64, tpu.core_type = #tpu.core_type<tc>, window_params = [{transform_indices = @transform_0, window_bounds = array<i64: 32, 2>}, {pipeline_mode = #tpu.pipeline_mode<synchronous>, transform_indices = @transform_1, window_bounds = array<i64: 64, 32>}, {pipeline_mode = #tpu.pipeline_mode<synchronous>, transform_indices = @transform_2, window_bounds = array<i64: 64, 1>}, {pipeline_mode = #tpu.pipeline_mode<synchronous>, transform_indices = @transform_3, window_bounds = array<i64: 64, 64>}, {pipeline_mode = #tpu.pipeline_mode<synchronous>, transform_indices = @transform_4, window_bounds = array<i64: 64, 1>}, {pipeline_mode = #tpu.pipeline_mode<synchronous>, transform_indices = @transform_5, window_bounds = array<i64: 64, 64>}, {pipeline_mode = #tpu.pipeline_mode<synchronous>, transform_indices = @transform_6, window_bounds = array<i64: 64, 1>}, {pipeline_mode = #tpu.pipeline_mode<synchronous>, transform_indices = @transform_7, window_bounds = array<i64: 64, 64>}, {pipeline_mode = #tpu.pipeline_mode<synchronous>, transform_indices = @transform_8, window_bounds = array<i64: 64, 1>}, {pipeline_mode = #tpu.pipeline_mode<synchronous>, transform_indices = @transform_9, window_bounds = array<i64: 32, 64>}, {pipeline_mode = #tpu.pipeline_mode<synchronous>, transform_indices = @transform_10, window_bounds = array<i64: 32, 1>}, {transform_indices = @transform_11, window_bounds = array<i64: 32, 2>}]} {
    %c0 = arith.constant 0 : index
    %c0_0 = arith.constant 0 : index
    %0 = vector.load %arg1[%c0, %c0_0] : memref<32x2xf32, #tpu.memory_space<vmem>>, vector<32x2xf32>
    %c0_1 = arith.constant 0 : index
    %c0_2 = arith.constant 0 : index
    %1 = vector.load %arg2[%c0_1, %c0_2] : memref<64x32xf32, #tpu.memory_space<vmem>>, vector<64x32xf32>
    %cst = arith.constant dense<0.000000e+00> : vector<64x2xf32>
    %2 = tpu.matmul %1, %0, %cst {dimension_numbers = #tpu.dot_dimension_numbers<[1], [0], [0], [1], [0, 0, 1, 1], [], []>} : vector<64x32xf32>, vector<32x2xf32>, vector<64x2xf32> -> vector<64x2xf32>
    %c0_3 = arith.constant 0 : index
    %c0_4 = arith.constant 0 : index
    %3 = vector.load %arg3[%c0_3, %c0_4] : memref<64x1xf32, #tpu.memory_space<vmem>>, vector<64x1xf32>
    %4 = vector.broadcast %3 : vector<64x1xf32> to vector<64x2xf32>
    %5 = arith.addf %2, %4 : vector<64x2xf32>
    %cst_5 = arith.constant 0.000000e+00 : f32
    %6 = vector.broadcast %cst_5 : f32 to vector<64x2xf32>
    %7 = arith.maximumf %5, %6 : vector<64x2xf32>
    %c0_6 = arith.constant 0 : index
    %c0_7 = arith.constant 0 : index
    %8 = vector.load %arg4[%c0_6, %c0_7] : memref<64x64xf32, #tpu.memory_space<vmem>>, vector<64x64xf32>
    %cst_8 = arith.constant dense<0.000000e+00> : vector<64x2xf32>
    %9 = tpu.matmul %8, %7, %cst_8 {dimension_numbers = #tpu.dot_dimension_numbers<[1], [0], [0], [1], [0, 0, 1, 1], [], []>} : vector<64x64xf32>, vector<64x2xf32>, vector<64x2xf32> -> vector<64x2xf32>
    %c0_9 = arith.constant 0 : index
    %c0_10 = arith.constant 0 : index
    %10 = vector.load %arg5[%c0_9, %c0_10] : memref<64x1xf32, #tpu.memory_space<vmem>>, vector<64x1xf32>
    %11 = vector.broadcast %10 : vector<64x1xf32> to vector<64x2xf32>
    %12 = arith.addf %9, %11 : vector<64x2xf32>
    %cst_11 = arith.constant 0.000000e+00 : f32
    %13 = vector.broadcast %cst_11 : f32 to vector<64x2xf32>
    %14 = arith.maximumf %12, %13 : vector<64x2xf32>
    %c0_12 = arith.constant 0 : index
    %c0_13 = arith.constant 0 : index
    %15 = vector.load %arg6[%c0_12, %c0_13] : memref<64x64xf32, #tpu.memory_space<vmem>>, vector<64x64xf32>
    %cst_14 = arith.constant dense<0.000000e+00> : vector<64x2xf32>
    %16 = tpu.matmul %15, %14, %cst_14 {dimension_numbers = #tpu.dot_dimension_numbers<[1], [0], [0], [1], [0, 0, 1, 1], [], []>} : vector<64x64xf32>, vector<64x2xf32>, vector<64x2xf32> -> vector<64x2xf32>
    %c0_15 = arith.constant 0 : index
    %c0_16 = arith.constant 0 : index
    %17 = vector.load %arg7[%c0_15, %c0_16] : memref<64x1xf32, #tpu.memory_space<vmem>>, vector<64x1xf32>
    %18 = vector.broadcast %17 : vector<64x1xf32> to vector<64x2xf32>
    %19 = arith.addf %16, %18 : vector<64x2xf32>
    %cst_17 = arith.constant 0.000000e+00 : f32
    %20 = vector.broadcast %cst_17 : f32 to vector<64x2xf32>
    %21 = arith.maximumf %19, %20 : vector<64x2xf32>
    %c0_18 = arith.constant 0 : index
    %c0_19 = arith.constant 0 : index
    %22 = vector.load %arg8[%c0_18, %c0_19] : memref<64x64xf32, #tpu.memory_space<vmem>>, vector<64x64xf32>
    %cst_20 = arith.constant dense<0.000000e+00> : vector<64x2xf32>
    %23 = tpu.matmul %22, %21, %cst_20 {dimension_numbers = #tpu.dot_dimension_numbers<[1], [0], [0], [1], [0, 0, 1, 1], [], []>} : vector<64x64xf32>, vector<64x2xf32>, vector<64x2xf32> -> vector<64x2xf32>
    %c0_21 = arith.constant 0 : index
    %c0_22 = arith.constant 0 : index
    %24 = vector.load %arg9[%c0_21, %c0_22] : memref<64x1xf32, #tpu.memory_space<vmem>>, vector<64x1xf32>
    %25 = vector.broadcast %24 : vector<64x1xf32> to vector<64x2xf32>
    %26 = arith.addf %23, %25 : vector<64x2xf32>
    %cst_23 = arith.constant 0.000000e+00 : f32
    %27 = vector.broadcast %cst_23 : f32 to vector<64x2xf32>
    %28 = arith.maximumf %26, %27 : vector<64x2xf32>
    %c0_24 = arith.constant 0 : index
    %c0_25 = arith.constant 0 : index
    %29 = vector.load %arg10[%c0_24, %c0_25] : memref<32x64xf32, #tpu.memory_space<vmem>>, vector<32x64xf32>
    %cst_26 = arith.constant dense<0.000000e+00> : vector<32x2xf32>
    %30 = tpu.matmul %29, %28, %cst_26 {dimension_numbers = #tpu.dot_dimension_numbers<[1], [0], [0], [1], [0, 0, 1, 1], [], []>} : vector<32x64xf32>, vector<64x2xf32>, vector<32x2xf32> -> vector<32x2xf32>
    %c0_27 = arith.constant 0 : index
    %c0_28 = arith.constant 0 : index
    %31 = vector.load %arg11[%c0_27, %c0_28] : memref<32x1xf32, #tpu.memory_space<vmem>>, vector<32x1xf32>
    %32 = vector.broadcast %31 : vector<32x1xf32> to vector<32x2xf32>
    %33 = arith.addf %30, %32 : vector<32x2xf32>
    %c0_29 = arith.constant 0 : index
    %c0_30 = arith.constant 0 : index
    %34 = vector.load %arg12[%c0_29, %c0_30] : memref<32x2xf32, #tpu.memory_space<vmem>>, vector<32x2xf32>
    tpu.vector_store %arg12[%c0_29, %c0_30], %33 {strides = array<i32>} : memref<32x2xf32, #tpu.memory_space<vmem>>, vector<32x2xf32>,
    return
  }
  func.func @transform_0(%arg0: i32) -> (i32, i32) {
    %c0_i32 = arith.constant 0 : i32
    %c0_i32_0 = arith.constant 0 : i32
    return %c0_i32, %arg0 : i32, i32
  }
  func.func @transform_1(%arg0: i32) -> (i32, i32) {
    %c0_i32 = arith.constant 0 : i32
    %c0_i32_0 = arith.constant 0 : i32
    %c0_i32_1 = arith.constant 0 : i32
    return %c0_i32, %c0_i32_0 : i32, i32
  }
  func.func @transform_2(%arg0: i32) -> (i32, i32) {
    %c0_i32 = arith.constant 0 : i32
    %c0_i32_0 = arith.constant 0 : i32
    %c0_i32_1 = arith.constant 0 : i32
    return %c0_i32, %c0_i32_0 : i32, i32
  }
  func.func @transform_3(%arg0: i32) -> (i32, i32) {
    %c0_i32 = arith.constant 0 : i32
    %c0_i32_0 = arith.constant 0 : i32
    %c0_i32_1 = arith.constant 0 : i32
    return %c0_i32, %c0_i32_0 : i32, i32
  }
  func.func @transform_4(%arg0: i32) -> (i32, i32) {
    %c0_i32 = arith.constant 0 : i32
    %c0_i32_0 = arith.constant 0 : i32
    %c0_i32_1 = arith.constant 0 : i32
    return %c0_i32, %c0_i32_0 : i32, i32
  }
  func.func @transform_5(%arg0: i32) -> (i32, i32) {
    %c0_i32 = arith.constant 0 : i32
    %c0_i32_0 = arith.constant 0 : i32
    %c0_i32_1 = arith.constant 0 : i32
    return %c0_i32, %c0_i32_0 : i32, i32
  }
  func.func @transform_6(%arg0: i32) -> (i32, i32) {
    %c0_i32 = arith.constant 0 : i32
    %c0_i32_0 = arith.constant 0 : i32
    %c0_i32_1 = arith.constant 0 : i32
    return %c0_i32, %c0_i32_0 : i32, i32
  }
  func.func @transform_7(%arg0: i32) -> (i32, i32) {
    %c0_i32 = arith.constant 0 : i32
    %c0_i32_0 = arith.constant 0 : i32
    %c0_i32_1 = arith.constant 0 : i32
    return %c0_i32, %c0_i32_0 : i32, i32
  }
  func.func @transform_8(%arg0: i32) -> (i32, i32) {
    %c0_i32 = arith.constant 0 : i32
    %c0_i32_0 = arith.constant 0 : i32
    %c0_i32_1 = arith.constant 0 : i32
    return %c0_i32, %c0_i32_0 : i32, i32
  }
  func.func @transform_9(%arg0: i32) -> (i32, i32) {
    %c0_i32 = arith.constant 0 : i32
    %c0_i32_0 = arith.constant 0 : i32
    %c0_i32_1 = arith.constant 0 : i32
    return %c0_i32, %c0_i32_0 : i32, i32
  }
  func.func @transform_10(%arg0: i32) -> (i32, i32) {
    %c0_i32 = arith.constant 0 : i32
    %c0_i32_0 = arith.constant 0 : i32
    %c0_i32_1 = arith.constant 0 : i32
    return %c0_i32, %c0_i32_0 : i32, i32
  }
  func.func @transform_11(%arg0: i32) -> (i32, i32) {
    %c0_i32 = arith.constant 0 : i32
    %c0_i32_0 = arith.constant 0 : i32
    return %c0_i32, %arg0 : i32, i32
  }
}

</mosaic_0001>

<bundles_post_ra>
// kernel: tpu_custom_call.1
= control target key start
LH: loop header
LB: loop body
LE: loop exit
PB: predicated region body
PF: predicated region fallthrough
CT: control target
= control target key end

     0   :  { %v682_v0 = vmov 0   ;;  %vm98_vm0 = vcmask 261120   ;;  %vm228_vm1 = vcmask 523264   ;;  %vm629_vm2 = vcmask 15360   ;;  %s1019_s2 = inlined_call_operand.vmem [shape: f32[64,1], index: 2, kind: input, shape index: {}]   ;;  %s1020_s0 = inlined_call_operand.vmem [shape: f32[32,2], index: 0, kind: input, shape index: {}]   ;;  %s1021_s1 = inlined_call_operand.vmem [shape: f32[64,32], index: 1, kind: input, shape index: {}]   ;;  %s1022_s4 = inlined_call_operand.vmem [shape: f32[64,1], index: 4, kind: input, shape index: {}]   ;;  %s1023_s6 = inlined_call_operand.vmem [shape: f32[64,1], index: 6, kind: input, shape index: {}]   ;;  %s1024_s8 = inlined_call_operand.vmem [shape: f32[64,1], index: 8, kind: input, shape index: {}]   ;;  %s1025_s10 = inlined_call_operand.vmem [shape: f32[32,1], index: 10, kind: input, shape index: {}]   ;;  %s1026_s3 = inlined_call_operand.vmem [shape: f32[64,64], index: 3, kind: input, shape index: {}]   ;;  %s1027_s5 = inlined_call_operand.vmem [shape: f32[64,64], index: 5, kind: input, shape index: {}]   ;;  %s1028_s7 = inlined_call_operand.vmem [shape: f32[64,64], index: 7, kind: input, shape index: {}]   ;;  %s1029_s9 = inlined_call_operand.vmem [shape: f32[32,64], index: 9, kind: input, shape index: {}]   ;;  %s1030_s11 = inlined_call_operand.vmem [shape: f32[32,2], index: 11, kind: output, shape index: {}]  }
   0x1   :  { %681 = vset.pattern.permute.xlu2 %v682_v0  ;;  %680 = vset.pattern.permute.xlu1 %v682_v0  ;;  %v57_v1 = vld [vmem:[%s1019_s2 + $0x38] sm:$0xff]  ;;  %v55_v2 = vld [vmem:[%s1019_s2 + $0x28] sm:$0xff]  ;;  %v40_v5 = vld [vmem:[%s1020_s0 + $0x10] sm:$0xff] }
   0x2   :  { %v53_v3 = vld [vmem:[%s1019_s2 + $0x18] sm:$0xff]  ;;  %679 = vset.pattern.permute.xlu0 %v682_v0  ;;  %85 = vperm.xlu1 %680, %v55_v2   ;;  %v39_v6 = vld [vmem:[%s1020_s0 + $0x8] sm:$0xff]  ;;  %v38_v7 = vld [vmem:[%s1020_s0] sm:$0xff] }
   0x3   :  { %v41_v4 = vld [vmem:[%s1020_s0 + $0x18] sm:$0xff]  ;;  %95 = vperm.xlu0 %679, %v57_v1   ;;  %75 = vperm.xlu2 %681, %v53_v3   ;;  %v54_v8 = vld [vmem:[%s1019_s2 + $0x20] sm:$0xff]  ;;  %v56_v10 = vld [vmem:[%s1019_s2 + $0x30] sm:$0xff] }
   0x4   :  { %135 = vmatpush.msra.mxu0 %v41_v4  ;;  %674 = vmatpush.msra.mxu1 %v41_v4  ;;  %v42_v9 = vld [vmem:[%s1021_s1] sm:$0xff]  ;;  %v52_v11 = vld [vmem:[%s1019_s2 + $0x10] sm:$0xff]  ;;  %v43_v14 = vld [vmem:[%s1021_s1 + $0x8] sm:$0xff] }
   0x5   :  { %v48_v12 = vld [vmem:[%s1021_s1 + $0x30] sm:$0xff]  ;;  %v50_v13 = vld [vmem:[%s1019_s2] sm:$0xff]  ;;  %v51_v15 = vld [vmem:[%s1019_s2 + $0x8] sm:$0xff] }
   0x6   :  { %136 = vmatpush.msra.mxu0 %v40_v5  ;;  %675 = vmatpush.msra.mxu1 %v40_v5  ;;  %v187_v16 = vld [vmem:[%s1022_s4 + $0x38] sm:$0xff]  ;;  %v185_v18 = vld [vmem:[%s1022_s4 + $0x28] sm:$0xff]  ;;  %v44_v19 = vld [vmem:[%s1021_s1 + $0x10] sm:$0xff] }
   0x7   :  { %v49_v17 = vld [vmem:[%s1021_s1 + $0x38] sm:$0xff]  ;;  %v186_v20 = vld [vmem:[%s1022_s4 + $0x30] sm:$0xff]  ;;  %v184_v21 = vld [vmem:[%s1022_s4 + $0x20] sm:$0xff] }
   0x8   :  { %137 = vmatpush.msra.mxu0 %v39_v6  ;;  %676 = vmatpush.msra.mxu1 %v39_v6  ;;  %v182_v22 = vld [vmem:[%s1022_s4 + $0x10] sm:$0xff]  ;;  %v45_v23 = vld [vmem:[%s1021_s1 + $0x18] sm:$0xff]  ;;  %v181_v25 = vld [vmem:[%s1022_s4 + $0x8] sm:$0xff] }
   0x9   :  { %v183_v24 = vld [vmem:[%s1022_s4 + $0x18] sm:$0xff]  ;;  %v46_v27 = vld [vmem:[%s1021_s1 + $0x20] sm:$0xff]  ;;  %v316_v29 = vld [vmem:[%s1023_s6 + $0x30] sm:$0xff] }
   0xa   :  { %138 = vmatpush.msra.mxu0 %v38_v7  ;;  %80 = vperm.xlu1 %680, %v54_v8   ;;  %v317_v26 = vld [vmem:[%s1023_s6 + $0x38] sm:$0xff]  ;;  %v180_v28 = vld [vmem:[%s1022_s4] sm:$0xff]  ;;  %v47_v31 = vld [vmem:[%s1021_s1 + $0x28] sm:$0xff] }
   0xb   :  { %638 = vmatmul.msk.f32.vlgmr.msra.gmra.mxu0 %vm98_vm0, %v42_v9  ;;  %90 = vperm.xlu0 %679, %v56_v10   ;;  %v314_v30 = vld [vmem:[%s1023_s6 + $0x20] sm:$0xff]  ;;  %v315_v32 = vld [vmem:[%s1023_s6 + $0x28] sm:$0xff]  ;;  %v313_v33 = vld [vmem:[%s1023_s6 + $0x18] sm:$0xff] }
   0xc   :  { %70 = vperm.xlu2 %681, %v52_v11   ;;  %677 = vmatpush.msra.mxu1 %v38_v7  ;;  %v311_v34 = vld [vmem:[%s1023_s6 + $0x8] sm:$0xff]  ;;  %v312_v35 = vld [vmem:[%s1023_s6 + $0x10] sm:$0xff]  ;;  %v310_v36 = vld [vmem:[%s1023_s6] sm:$0xff] }
   0xd   :  { %644 = vmatmul.msk.f32.vlgmr.msra.gmra.mxu1 %vm98_vm0, %v48_v12  ;;  %v445_v37 = vld [vmem:[%s1024_s8 + $0x30] sm:$0xff]  ;;  %v446_v38 = vld [vmem:[%s1024_s8 + $0x38] sm:$0xff]  ;;  %v444_v39 = vld [vmem:[%s1024_s8 + $0x28] sm:$0xff] }
   0xe   :  { %v442_v40 = vld [vmem:[%s1024_s8 + $0x18] sm:$0xff]  ;;  %v443_v41 = vld [vmem:[%s1024_s8 + $0x20] sm:$0xff]  ;;  %v441_v42 = vld [vmem:[%s1024_s8 + $0x10] sm:$0xff] }
   0xf   :  { %v439_v43 = vld [vmem:[%s1024_s8] sm:$0xff]  ;;  %v440_v44 = vld [vmem:[%s1024_s8 + $0x8] sm:$0xff]  ;;  %v566_v46 = vld [vmem:[%s1025_s10 + $0x10] sm:$0xff] }
  0x10   :  { %v564_v45 = vld [vmem:[%s1025_s10] sm:$0xff]  ;;  %v565_v47 = vld [vmem:[%s1025_s10 + $0x8] sm:$0xff]  ;;  %v567_v48 = vld [vmem:[%s1025_s10 + $0x18] sm:$0xff] }
  0x12   :  { %60 = vperm.xlu1 %680, %v50_v13  }
  0x13   :  { %639 = vmatmul.msk.f32.gmra.mxu0 %vm98_vm0, %v43_v14  ;;  %65 = vperm.xlu0 %679, %v51_v15  }
  0x14   :  { %225 = vperm.xlu2 %681, %v187_v16  }
  0x15   :  { %645 = vmatmul.msk.f32.gmra.mxu1 %vm98_vm0, %v49_v17  ;;  %v172_v17 = vld [vmem:[%s1026_s3] sm:$0xff] }
  0x1a   :  { %215 = vperm.xlu1 %680, %v185_v18   ;;  %v173_v18 = vld [vmem:[%s1026_s3 + $0x8] sm:$0xff] }
  0x1b   :  { %640 = vmatmul.msk.f32.gmra.mxu0 %vm98_vm0, %v44_v19  ;;  %220 = vperm.xlu0 %679, %v186_v20   ;;  %v174_v19 = vld [vmem:[%s1026_s3 + $0x10] sm:$0xff]  ;;  %v175_v20 = vld [vmem:[%s1026_s3 + $0x18] sm:$0xff] }
  0x1c   :  { %210 = vperm.xlu2 %681, %v184_v21   ;;  %v176_v21 = vld [vmem:[%s1026_s3 + $0x20] sm:$0xff] }
  0x22   :  { %200 = vperm.xlu1 %680, %v182_v22   ;;  %v177_v22 = vld [vmem:[%s1026_s3 + $0x28] sm:$0xff] }
  0x23   :  { %641 = vmatmul.msk.f32.gmra.mxu0 %vm98_vm0, %v45_v23  ;;  %205 = vperm.xlu0 %679, %v183_v24   ;;  %v178_v23 = vld [vmem:[%s1026_s3 + $0x30] sm:$0xff]  ;;  %v179_v24 = vld [vmem:[%s1026_s3 + $0x38] sm:$0xff] }
  0x24   :  { %195 = vperm.xlu2 %681, %v181_v25  }
  0x2a   :  { %355 = vperm.xlu1 %680, %v317_v26  }
  0x2b   :  { %642 = vmatmul.msk.f32.gmra.mxu0 %vm98_vm0, %v46_v27  ;;  %190 = vperm.xlu0 %679, %v180_v28  }
  0x2c   :  { %350 = vperm.xlu2 %681, %v316_v29  }
  0x32   :  { %340 = vperm.xlu1 %680, %v314_v30  }
  0x33   :  { %643 = vmatmul.msk.f32.gmra.mxu0 %vm98_vm0, %v47_v31  ;;  %345 = vperm.xlu0 %679, %v315_v32  }
  0x34   :  { %335 = vperm.xlu2 %681, %v313_v33  }
  0x3a   :  { %325 = vperm.xlu1 %680, %v311_v34  }
  0x3b   :  { %330 = vperm.xlu0 %679, %v312_v35  }
  0x3c   :  { %320 = vperm.xlu2 %681, %v310_v36  }
  0x42   :  { %479 = vperm.xlu1 %680, %v445_v37  }
  0x43   :  { %484 = vperm.xlu0 %679, %v446_v38  }
  0x44   :  { %474 = vperm.xlu2 %681, %v444_v39  }
  0x4a   :  { %464 = vperm.xlu1 %680, %v442_v40  }
  0x4b   :  { %469 = vperm.xlu0 %679, %v443_v41  }
  0x4c   :  { %459 = vperm.xlu2 %681, %v441_v42  }
  0x52   :  { %449 = vperm.xlu1 %680, %v439_v43  }
  0x53   :  { %454 = vperm.xlu0 %679, %v440_v44  }
  0x54   :  { %570 = vperm.xlu2 %681, %v564_v45  }
  0x5a   :  { %580 = vperm.xlu1 %680, %v566_v46  }
  0x5b   :  { %575 = vperm.xlu0 %679, %v565_v47  }
  0x5c   :  { %585 = vperm.xlu2 %681, %v567_v48  }
  0x5d   :  { %v76_v63 = vpop.permute.xlu2 %75 }
  0x66   :  { %v71_v6 = vpop.permute.xlu2 %70 }
  0x6e   :  { %v226_v31 = vpop.permute.xlu2 %225 }
  0x74   :  { %v86_v61 = vpop.permute.xlu1 %85 }
  0x75   :  { %v96_v49 = vpop.permute.xlu0 %95 }
  0x76   :  { %v211_v35 = vpop.permute.xlu2 %210 }
  0x7c   :  { %v81_v0 = vpop.permute.xlu1 %80 }
  0x7d   :  { %v91_v52 = vpop.permute.xlu0 %90 }
  0x84   :  { %v61_v12 = vpop.permute.xlu1 %60 }
  0x85   :  { %v66_v9 = vpop.permute.xlu0 %65 }
  0x88   :  { %v140_v50 = vpop.f32.mrf.mxu0 }
  0x89   :  { %v141_v13 = vadd.f32 %v140_v50, %v61_v12 }
  0x8a   :  { %v158_v51 = vpop.f32.mrf.mxu1 }
  0x8b   :  { %v159_v54 = vadd.f32 %v158_v51, %v91_v52  ;;  %v164_v16 = vmax.f32 %v141_v13, 0.0 }
  0x8c   :  { %v216_v34 = vpop.permute.xlu1 %215 }
  0x8d   :  { %v170_v57 = vmax.f32 %v159_v54, 0.0  ;;  %v221_v32 = vpop.permute.xlu0 %220 }
  0x90   :  { %v143_v53 = vpop.f32.mrf.mxu0 }
  0x91   :  { %v144_v10 = vadd.f32 %v143_v53, %v66_v9 }
  0x92   :  { %v161_v55 = vpop.f32.mrf.mxu1 }
  0x93   :  { %v162_v56 = vadd.f32 %v161_v55, %v96_v49  ;;  %v165_v15 = vmax.f32 %v144_v10, 0.0  ;;  %v196_v49 = vpop.permute.xlu2 %195 }
  0x94   :  { %v201_v46 = vpop.permute.xlu1 %200 }
  0x95   :  { %v171_v58 = vmax.f32 %v162_v56, 0.0  ;;  %v206_v39 = vpop.permute.xlu0 %205 }
  0x97   :  { %261 = vmatpush.msrb.mxu1 %v171_v58  ;;  %v303_v58 = vld [vmem:[%s1027_s5 + $0x8] sm:$0xff] }
  0x98   :  { %v146_v59 = vpop.f32.mrf.mxu0 }
  0x99   :  { %262 = vmatpush.msrb.mxu1 %v170_v57  ;;  %v147_v7 = vadd.f32 %v146_v59, %v71_v6  ;;  %v302_v57 = vld [vmem:[%s1027_s5] sm:$0xff]  ;;  %v304_v59 = vld [vmem:[%s1027_s5 + $0x10] sm:$0xff] }
  0x9b   :  { %v166_v14 = vmax.f32 %v147_v7, 0.0 }
  0x9c   :  { %v356_v7 = vpop.permute.xlu1 %355 }
  0x9d   :  { %v191_v52 = vpop.permute.xlu0 %190 }
  0xa0   :  { %v149_v60 = vpop.f32.mrf.mxu0 }
  0xa1   :  { %v150_v4 = vadd.f32 %v149_v60, %v76_v63  ;;  %v305_v60 = vld [vmem:[%s1027_s5 + $0x18] sm:$0xff]  ;;  %v308_v63 = vld [vmem:[%s1027_s5 + $0x30] sm:$0xff] }
  0xa3   :  { %v167_v11 = vmax.f32 %v150_v4, 0.0 }
  0xa5   :  { %v346_v10 = vpop.permute.xlu0 %345 }
  0xa8   :  { %v152_v62 = vpop.f32.mrf.mxu0 }
  0xa9   :  { %v153_v2 = vadd.f32 %v152_v62, %v81_v0  ;;  %v307_v62 = vld [vmem:[%s1027_s5 + $0x28] sm:$0xff]  ;;  %v309_v0 = vld [vmem:[%s1027_s5 + $0x38] sm:$0xff] }
  0xab   :  { %v168_v8 = vmax.f32 %v153_v2, 0.0 }
  0xb0   :  { %v155_v1 = vpop.f32.mrf.mxu0 }
  0xb1   :  { %v156_v3 = vadd.f32 %v155_v1, %v86_v61  ;;  %v306_v61 = vld [vmem:[%s1027_s5 + $0x20] sm:$0xff] }
  0xb3   :  { %v169_v5 = vmax.f32 %v156_v3, 0.0 }
  0xb5   :  { %263 = vmatpush.msrb.mxu1 %v169_v5 }
  0xb7   :  { %264 = vmatpush.msrb.mxu1 %v168_v8  ;;  %v351_v8 = vpop.permute.xlu2 %350 }
  0xb9   :  { %265 = vmatpush.msrb.mxu1 %v167_v11  ;;  %v341_v11 = vpop.permute.xlu1 %340 }
  0xbb   :  { %266 = vmatpush.msrb.mxu1 %v166_v14 }
  0xbd   :  { %267 = vmatpush.msrb.mxu1 %v165_v15 }
  0xbf   :  { %268 = vmatpush.msrb.mxu1 %v164_v16  ;;  %v336_v15 = vpop.permute.xlu2 %335 }
  0xc0   :  { %646 = vmatmul.msk.f32.vlgmr.msrb.gmra.mxu1 %vm228_vm1, %v172_v17 }
  0xc8   :  { %647 = vmatmul.msk.f32.gmra.mxu1 %vm228_vm1, %v173_v18 }
  0xd0   :  { %648 = vmatmul.msk.f32.gmra.mxu1 %vm228_vm1, %v174_v19 }
  0xd8   :  { %649 = vmatmul.msk.f32.gmra.mxu1 %vm228_vm1, %v175_v20 }
  0xe0   :  { %650 = vmatmul.msk.f32.gmra.mxu1 %vm228_vm1, %v176_v21 }
  0xe8   :  { %651 = vmatmul.msk.f32.gmra.mxu1 %vm228_vm1, %v177_v22  ;;  %v331_v22 = vpop.permute.xlu0 %330 }
  0xf0   :  { %652 = vmatmul.msk.f32.gmra.mxu1 %vm228_vm1, %v178_v23 }
  0xf8   :  { %653 = vmatmul.msk.f32.gmra.mxu1 %vm228_vm1, %v179_v24 }
 0x13d   :  { %v270_v25 = vpop.f32.mrf.mxu1 }
 0x13e   :  { %v271_v53 = vadd.f32 %v270_v25, %v191_v52  ;;  %v326_v25 = vpop.permute.xlu1 %325 }
 0x140   :  { %v294_v56 = vmax.f32 %v271_v53, 0.0 }
 0x145   :  { %v273_v26 = vpop.f32.mrf.mxu1 }
 0x146   :  { %v274_v50 = vadd.f32 %v273_v26, %v196_v49 }
 0x148   :  { %v295_v55 = vmax.f32 %v274_v50, 0.0 }
 0x14d   :  { %v276_v27 = vpop.f32.mrf.mxu1 }
 0x14e   :  { %v277_v47 = vadd.f32 %v276_v27, %v201_v46 }
 0x150   :  { %v296_v54 = vmax.f32 %v277_v47, 0.0  ;;  %v485_v47 = vpop.permute.xlu0 %484 }
 0x155   :  { %v279_v28 = vpop.f32.mrf.mxu1 }
 0x156   :  { %v280_v44 = vadd.f32 %v279_v28, %v206_v39  ;;  %v321_v28 = vpop.permute.xlu2 %320  ;;  %v437_v39 = vld [vmem:[%s1028_s7 + $0x30] sm:$0xff] }
 0x158   :  { %v297_v51 = vmax.f32 %v280_v44, 0.0 }
 0x15d   :  { %v282_v29 = vpop.f32.mrf.mxu1 }
 0x15e   :  { %v283_v42 = vadd.f32 %v282_v29, %v211_v35  ;;  %v433_v35 = vld [vmem:[%s1028_s7 + $0x10] sm:$0xff]  ;;  %v475_v50 = vpop.permute.xlu2 %474 }
 0x160   :  { %v298_v48 = vmax.f32 %v283_v42, 0.0 }
 0x165   :  { %v285_v30 = vpop.f32.mrf.mxu1 }
 0x166   :  { %v286_v40 = vadd.f32 %v285_v30, %v216_v34  ;;  %v432_v34 = vld [vmem:[%s1028_s7 + $0x8] sm:$0xff] }
 0x168   :  { %v299_v45 = vmax.f32 %v286_v40, 0.0  ;;  %v438_v40 = vld [vmem:[%s1028_s7 + $0x38] sm:$0xff] }
 0x16d   :  { %v288_v33 = vpop.f32.mrf.mxu1 }
 0x16e   :  { %v289_v37 = vadd.f32 %v288_v33, %v221_v32  ;;  %v431_v33 = vld [vmem:[%s1028_s7] sm:$0xff] }
 0x170   :  { %v300_v43 = vmax.f32 %v289_v37, 0.0  ;;  %v435_v37 = vld [vmem:[%s1028_s7 + $0x20] sm:$0xff] }
 0x175   :  { %v291_v36 = vpop.f32.mrf.mxu1 }
 0x176   :  { %v292_v38 = vadd.f32 %v291_v36, %v226_v31  ;;  %v434_v36 = vld [vmem:[%s1028_s7 + $0x18] sm:$0xff] }
 0x178   :  { %v301_v41 = vmax.f32 %v292_v38, 0.0  ;;  %v436_v38 = vld [vmem:[%s1028_s7 + $0x28] sm:$0xff] }
 0x17a   :  { %390 = vmatpush.msra.mxu2 %v301_v41 }
 0x17c   :  { %391 = vmatpush.msra.mxu2 %v300_v43 }
 0x17e   :  { %392 = vmatpush.msra.mxu2 %v299_v45 }
 0x180   :  { %393 = vmatpush.msra.mxu2 %v298_v48  ;;  %v480_v48 = vpop.permute.xlu1 %479 }
 0x182   :  { %394 = vmatpush.msra.mxu2 %v297_v51  ;;  %v470_v51 = vpop.permute.xlu0 %469 }
 0x184   :  { %395 = vmatpush.msra.mxu2 %v296_v54 }
 0x186   :  { %396 = vmatpush.msra.mxu2 %v295_v55 }
 0x188   :  { %397 = vmatpush.msra.mxu2 %v294_v56  ;;  %v465_v55 = vpop.permute.xlu1 %464 }
 0x189   :  { %654 = vmatmul.msk.f32.vlgmr.msra.gmra.mxu2 %vm228_vm1, %v302_v57 }
 0x191   :  { %655 = vmatmul.msk.f32.gmra.mxu2 %vm228_vm1, %v303_v58 }
 0x199   :  { %656 = vmatmul.msk.f32.gmra.mxu2 %vm228_vm1, %v304_v59 }
 0x1a1   :  { %657 = vmatmul.msk.f32.gmra.mxu2 %vm228_vm1, %v305_v60 }
 0x1a9   :  { %658 = vmatmul.msk.f32.gmra.mxu2 %vm228_vm1, %v306_v61 }
 0x1b1   :  { %659 = vmatmul.msk.f32.gmra.mxu2 %vm228_vm1, %v307_v62  ;;  %v460_v62 = vpop.permute.xlu2 %459 }
 0x1b9   :  { %660 = vmatmul.msk.f32.gmra.mxu2 %vm228_vm1, %v308_v63 }
 0x1c1   :  { %661 = vmatmul.msk.f32.gmra.mxu2 %vm228_vm1, %v309_v0 }
 0x20c   :  { %v399_v1 = vpop.f32.mrf.mxu2 }
 0x20d   :  { %v400_v29 = vadd.f32 %v399_v1, %v321_v28  ;;  %v455_v1 = vpop.permute.xlu0 %454 }
 0x20f   :  { %v423_v32 = vmax.f32 %v400_v29, 0.0 }
 0x214   :  { %v402_v2 = vpop.f32.mrf.mxu2 }
 0x215   :  { %v403_v26 = vadd.f32 %v402_v2, %v326_v25 }
 0x217   :  { %v424_v31 = vmax.f32 %v403_v26, 0.0 }
 0x21c   :  { %v405_v3 = vpop.f32.mrf.mxu2 }
 0x21d   :  { %v406_v23 = vadd.f32 %v405_v3, %v331_v22 }
 0x21f   :  { %v425_v30 = vmax.f32 %v406_v23, 0.0 }
 0x224   :  { %v408_v4 = vpop.f32.mrf.mxu2 }
 0x225   :  { %v409_v20 = vadd.f32 %v408_v4, %v336_v15  ;;  %v450_v4 = vpop.permute.xlu1 %449 }
 0x227   :  { %v426_v27 = vmax.f32 %v409_v20, 0.0 }
 0x22c   :  { %v411_v5 = vpop.f32.mrf.mxu2 }
 0x22d   :  { %v412_v18 = vadd.f32 %v411_v5, %v341_v11  ;;  %v562_v11 = vld [vmem:[%s1029_s9 + $0x10] sm:$0xff] }
 0x22f   :  { %v427_v24 = vmax.f32 %v412_v18, 0.0 }
 0x234   :  { %v414_v6 = vpop.f32.mrf.mxu2 }
 0x235   :  { %v415_v16 = vadd.f32 %v414_v6, %v346_v10  ;;  %v561_v10 = vld [vmem:[%s1029_s9 + $0x8] sm:$0xff] }
 0x237   :  { %v428_v21 = vmax.f32 %v415_v16, 0.0  ;;  %v576_v16 = vpop.permute.xlu0 %575 }
 0x23c   :  { %v417_v9 = vpop.f32.mrf.mxu2 }
 0x23d   :  { %v418_v13 = vadd.f32 %v417_v9, %v351_v8  ;;  %v560_v9 = vld [vmem:[%s1029_s9] sm:$0xff] }
 0x23f   :  { %v429_v19 = vmax.f32 %v418_v13, 0.0  ;;  %v571_v13 = vpop.permute.xlu2 %570 }
 0x244   :  { %v420_v12 = vpop.f32.mrf.mxu2 }
 0x245   :  { %v421_v14 = vadd.f32 %v420_v12, %v356_v7  ;;  %v563_v12 = vld [vmem:[%s1029_s9 + $0x18] sm:$0xff] }
 0x247   :  { %v430_v17 = vmax.f32 %v421_v14, 0.0  ;;  %v586_v22 = vpop.permute.xlu2 %585 }
 0x249   :  { %519 = vmatpush.msra.mxu3 %v430_v17 }
 0x24b   :  { %520 = vmatpush.msra.mxu3 %v429_v19  ;;  %v581_v19 = vpop.permute.xlu1 %580 }
 0x24d   :  { %521 = vmatpush.msra.mxu3 %v428_v21 }
 0x24f   :  { %522 = vmatpush.msra.mxu3 %v427_v24 }
 0x251   :  { %523 = vmatpush.msra.mxu3 %v426_v27 }
 0x253   :  { %524 = vmatpush.msra.mxu3 %v425_v30 }
 0x255   :  { %525 = vmatpush.msra.mxu3 %v424_v31 }
 0x257   :  { %526 = vmatpush.msra.mxu3 %v423_v32 }
 0x258   :  { %662 = vmatmul.msk.f32.vlgmr.msra.gmra.mxu3 %vm228_vm1, %v431_v33 }
 0x260   :  { %663 = vmatmul.msk.f32.gmra.mxu3 %vm228_vm1, %v432_v34 }
 0x268   :  { %664 = vmatmul.msk.f32.gmra.mxu3 %vm228_vm1, %v433_v35 }
 0x270   :  { %665 = vmatmul.msk.f32.gmra.mxu3 %vm228_vm1, %v434_v36 }
 0x278   :  { %666 = vmatmul.msk.f32.gmra.mxu3 %vm228_vm1, %v435_v37 }
 0x280   :  { %667 = vmatmul.msk.f32.gmra.mxu3 %vm228_vm1, %v436_v38 }
 0x288   :  { %668 = vmatmul.msk.f32.gmra.mxu3 %vm228_vm1, %v437_v39 }
 0x290   :  { %669 = vmatmul.msk.f32.gmra.mxu3 %vm228_vm1, %v438_v40 }
 0x2db   :  { %v528_v41 = vpop.f32.mrf.mxu3 }
 0x2dc   :  { %v529_v5 = vadd.f32 %v528_v41, %v450_v4 }
 0x2de   :  { %v552_v8 = vmax.f32 %v529_v5, 0.0 }
 0x2e3   :  { %v531_v42 = vpop.f32.mrf.mxu3 }
 0x2e4   :  { %v532_v2 = vadd.f32 %v531_v42, %v455_v1 }
 0x2e6   :  { %v553_v7 = vmax.f32 %v532_v2, 0.0 }
 0x2eb   :  { %v534_v43 = vpop.f32.mrf.mxu3 }
 0x2ec   :  { %v535_v63 = vadd.f32 %v534_v43, %v460_v62 }
 0x2ee   :  { %v554_v6 = vmax.f32 %v535_v63, 0.0 }
 0x2f3   :  { %v537_v44 = vpop.f32.mrf.mxu3 }
 0x2f4   :  { %v538_v60 = vadd.f32 %v537_v44, %v465_v55 }
 0x2f6   :  { %v555_v3 = vmax.f32 %v538_v60, 0.0 }
 0x2fb   :  { %v540_v45 = vpop.f32.mrf.mxu3 }
 0x2fc   :  { %v541_v58 = vadd.f32 %v540_v45, %v470_v51 }
 0x2fe   :  { %v556_v0 = vmax.f32 %v541_v58, 0.0 }
 0x303   :  { %v543_v46 = vpop.f32.mrf.mxu3 }
 0x304   :  { %v544_v56 = vadd.f32 %v543_v46, %v475_v50 }
 0x306   :  { %v557_v61 = vmax.f32 %v544_v56, 0.0 }
 0x30b   :  { %v546_v49 = vpop.f32.mrf.mxu3 }
 0x30c   :  { %v547_v53 = vadd.f32 %v546_v49, %v480_v48 }
 0x30e   :  { %v558_v59 = vmax.f32 %v547_v53, 0.0 }
 0x313   :  { %v549_v52 = vpop.f32.mrf.mxu3 }
 0x314   :  { %v550_v54 = vadd.f32 %v549_v52, %v485_v47 }
 0x316   :  { %v559_v57 = vmax.f32 %v550_v54, 0.0 }
 0x318   :  { %608 = vmatpush.msrb.mxu0 %v559_v57 }
 0x31a   :  { %609 = vmatpush.msrb.mxu0 %v558_v59 }
 0x31c   :  { %610 = vmatpush.msrb.mxu0 %v557_v61 }
 0x31e   :  { %611 = vmatpush.msrb.mxu0 %v556_v0 }
 0x320   :  { %612 = vmatpush.msrb.mxu0 %v555_v3 }
 0x322   :  { %613 = vmatpush.msrb.mxu0 %v554_v6 }
 0x324   :  { %614 = vmatpush.msrb.mxu0 %v553_v7 }
 0x326   :  { %615 = vmatpush.msrb.mxu0 %v552_v8 }
 0x327   :  { %670 = vmatmul.msk.f32.vlgmr.msrb.gmra.mxu0 %vm228_vm1, %v560_v9 }
 0x32f   :  { %671 = vmatmul.msk.f32.gmra.mxu0 %vm228_vm1, %v561_v10 }
 0x337   :  { %672 = vmatmul.msk.f32.gmra.mxu0 %vm228_vm1, %v562_v11 }
 0x33f   :  { %673 = vmatmul.msk.f32.gmra.mxu0 %vm228_vm1, %v563_v12 }
 0x3a4   :  { %v617_v14 = vpop.f32.mrf.mxu0 }
 0x3a5   :  { %v618_v15 = vadd.f32 %v617_v14, %v571_v13 }
 0x3a7   :  { %630 = vst.msk [vmem:[%s1030_s11] sm:$0xff] %vm629_vm2, %v618_v15 }
 0x3ac   :  { %v620_v17 = vpop.f32.mrf.mxu0 }
 0x3ad   :  { %v621_v18 = vadd.f32 %v620_v17, %v576_v16 }
 0x3af   :  { %631 = vst.msk [vmem:[%s1030_s11 + $0x8] sm:$0xff] %vm629_vm2, %v621_v18 }
 0x3b4   :  { %v623_v20 = vpop.f32.mrf.mxu0 }
 0x3b5   :  { %v624_v21 = vadd.f32 %v623_v20, %v581_v19 }
 0x3b7   :  { %632 = vst.msk [vmem:[%s1030_s11 + $0x10] sm:$0xff] %vm629_vm2, %v624_v21 }
 0x3bc   :  { %v626_v23 = vpop.f32.mrf.mxu0 }
 0x3bd   :  { %v627_v24 = vadd.f32 %v626_v23, %v586_v22 }
 0x3bf   :  { %633 = vst.msk [vmem:[%s1030_s11 + $0x18] sm:$0xff] %vm629_vm2, %v627_v24 }

</bundles_post_ra>
